<compile_context>
chip_gen: v5e
topology: v5e:2x2
jax: 0.10.0
libtpu: 0.0.40
codegen_flags: <defaults>
</compile_context>

<pallas_src>
import functools
import math

import numpy as np

import jax
import jax.numpy as jnp
from jax.experimental import pallas as pl
from jax.experimental.pallas import tpu as pltpu


_LANE = 128
_SUBLANE_BYTES = 32  # 8 sublanes * 4 bytes


def _cdiv(a, b):
    return -(-a // b)


def _round_up(x, m):
    return _cdiv(x, m) * m


def _vmem_limit(footprint_bytes):
    # Explicit scoped-VMEM limit matching the padded, double-buffered footprint
    # plus headroom; capped so it always fits v7x's 64 MiB physical VMEM.
    return int(min(56 * 2**20, max(16 * 2**20, footprint_bytes + 4 * 2**20)))


# ----------------------------- kernels ------------------------------------- #

def _add_pe_lane_kernel(x_ref, pe_ref, o_ref, *, batch):
    """Dense path. x_ref/o_ref: (ts, batch*D); pe_ref: (ts, D).

    pe is replicated across the batch along the lane axis (vreg-aligned concat
    since D % 128 == 0 on this path)."""
    pe = pe_ref[...].astype(jnp.float32)
    if batch > 1:
        pe = jnp.concatenate([pe] * batch, axis=-1)
    o_ref[...] = (x_ref[...].astype(jnp.float32) + pe).astype(o_ref.dtype)


def _add_pe_3d_kernel(x_ref, pe_ref, o_ref):
    """Fallback path. x_ref/o_ref: (ts, B, D); pe_ref: (ts, 1, D) -> batch broadcast."""
    x = x_ref[...].astype(jnp.float32)
    pe = pe_ref[...].astype(jnp.float32)
    o_ref[...] = (x + pe).astype(o_ref.dtype)


# -------------------------- PE table (buffer) ------------------------------- #

_PE_CACHE = {}


def _pe_table(seq_len, d_model, dtype):
    """Sinusoidal table pe[:seq_len, :], cached (PyTorch register_buffer semantics)."""
    key = (int(seq_len), int(d_model), np.dtype(dtype).name)
    tab = _PE_CACHE.get(key)
    if tab is None:
        position = np.arange(seq_len, dtype=np.float32)[:, None]
        div_term = np.exp(
            np.arange(0, d_model, 2, dtype=np.float32)
            * (-math.log(10000.0) / d_model)
        )
        ang = position * div_term
        pe = np.zeros((seq_len, d_model), dtype=np.float32)
        pe[:, 0::2] = np.sin(ang)
        pe[:, 1::2] = np.cos(ang[:, : d_model // 2])
        tab = jnp.asarray(pe, dtype=dtype)
        _PE_CACHE[key] = tab
    return tab


# ------------------------------ wrapper ------------------------------------- #

def positional_encoding(x, *, vmem_target_bytes=24 * 1024 * 1024):
    """x: (seq_len, batch, d_model). Returns x + pe[:seq_len] (broadcast over batch).

    Output dtype == x.dtype (PyTorch's fp32 buffer would promote 16-bit x to fp32)."""
    S, B, D = x.shape
    if D % 2 != 0:
        # The canonical PyTorch module errors on odd d_model as well.
        raise ValueError("d_model must be even.")

    e_x = x.dtype.itemsize
    # pe at x precision for 16-bit inputs (halves its HBM read); fp32 otherwise.
    pe_dtype = x.dtype if e_x == 2 else jnp.float32
    pe = _pe_table(S, D, pe_dtype)                       # (S, D), cached constant
    e_pe = pe.dtype.itemsize

    sub_x = _SUBLANE_BYTES // e_x                        # 8 (f32) / 16 (bf16)
    sub_pe = _SUBLANE_BYTES // e_pe

    use_dense = (B < sub_x) and (D % _LANE == 0)

    if use_dense:
        # Fold batch into the lane axis: (S, B, D) -> (S, B*D). Free: contiguous.
        x2 = x.reshape(S, B * D)
        # Padding-aware bytes per sequence row, double-buffered (x in + out + pe).
        per_row = 2 * (2 * B * D * e_x + D * e_pe)
        ts = max(1, min(S, vmem_target_bytes // per_row))
        if ts < S:
            ts = max(sub_x, (ts // sub_x) * sub_x)       # keep blocks sublane-dense
        # v7x megacore: prefer >= 2 grid steps when alignment allows.
        if _cdiv(S, ts) < 2 and S > sub_x:
            ts = min(ts, _round_up(_cdiv(S, 2), sub_x))
        ts = min(ts, S)
        grid = (_cdiv(S, ts),)
        footprint = 2 * _round_up(ts, sub_x) * (2 * B * D * e_x + D * e_pe)

        out2 = pl.pallas_call(
            functools.partial(_add_pe_lane_kernel, batch=B),
            out_shape=jax.ShapeDtypeStruct((S, B * D), x.dtype),
            grid=grid,
            in_specs=[
                pl.BlockSpec((ts, B * D), lambda i: (i, 0)),
                pl.BlockSpec((ts, D), lambda i: (i, 0)),
            ],
            out_specs=pl.BlockSpec((ts, B * D), lambda i: (i, 0)),
            compiler_params=pltpu.CompilerParams(
                dimension_semantics=("parallel",),
                vmem_limit_bytes=_vmem_limit(footprint),
            ),
        )(x2, pe)
        return out2.reshape(S, B, D)

    # Fallback: 3-D blocks; batch sits on sublanes (fine once B >= sublane packing,
    # or when d_model is not a multiple of 128).
    pe3 = pe[:, None, :]                                 # (S, 1, D)
    Bpad = _round_up(B, sub_x)
    Dpad = _round_up(D, _LANE)
    per_row = 2 * (2 * Bpad * Dpad * e_x + sub_pe * Dpad * e_pe)
    ts = max(1, min(S, vmem_target_bytes // per_row))
    if _cdiv(S, ts) < 2 and S > 1:                       # v7x: feed both TensorCores
        ts = _cdiv(S, 2)
    grid = (_cdiv(S, ts),)
    footprint = 2 * ts * (2 * Bpad * Dpad * e_x + sub_pe * Dpad * e_pe)

    return pl.pallas_call(
        _add_pe_3d_kernel,
        out_shape=jax.ShapeDtypeStruct((S, B, D), x.dtype),
        grid=grid,
        in_specs=[
            pl.BlockSpec((ts, B, D), lambda i: (i, 0, 0)),
            pl.BlockSpec((ts, 1, D), lambda i: (i, 0, 0)),
        ],
        out_specs=pl.BlockSpec((ts, B, D), lambda i: (i, 0, 0)),
        compiler_params=pltpu.CompilerParams(
            dimension_semantics=("parallel",),
            vmem_limit_bytes=_vmem_limit(footprint),
        ),
    )(x, pe3)


# ----------------------------- reference ------------------------------------ #

def _reference(x):
    """Pure-JAX reference mirroring the PyTorch module."""
    S, _, D = x.shape
    position = jnp.arange(S, dtype=jnp.float32)[:, None]
    div_term = jnp.exp(
        jnp.arange(0, D, 2, dtype=jnp.float32) * (-math.log(10000.0) / D)
    )
    pe = jnp.zeros((S, D), dtype=jnp.float32)
    pe = pe.at[:, 0::2].set(jnp.sin(position * div_term))
    pe = pe.at[:, 1::2].set(jnp.cos(position * div_term))
    return x + pe[:, None, :].astype(x.dtype)


if __name__ == "__main__":
    key = jax.random.PRNGKey(0)

    # Dense lane-folded path: batch < sublane packing, d_model % 128 == 0.
    seq_len, batch, d_model = 8, 2, 128
    x1 = jax.random.normal(key, (seq_len, batch, d_model), dtype=jnp.float32)
    out1 = positional_encoding(x1)
    jax.block_until_ready(out1)
    assert out1.shape == (seq_len, batch, d_model)
    assert jnp.allclose(out1, _reference(x1), atol=1e-5, rtol=1e-5)

    # 3-D fallback path: d_model not a multiple of 128.
    x2 = jax.random.normal(jax.random.PRNGKey(1), (8, 2, 32), dtype=jnp.float32)
    out2 = positional_encoding(x2)
    jax.block_until_ready(out2)
    assert jnp.allclose(out2, _reference(x2), atol=1e-5, rtol=1e-5)

    print("KERNEL_OK")
</pallas_src>

<mosaic_0001>
module attributes {stable_mosaic.version = 11 : i64} {
  func.func @_add_pe_lane_kernel(%arg0: i32, %arg1: memref<8x256xf32, #tpu.memory_space<vmem>>, %arg2: memref<8x128xf32, #tpu.memory_space<vmem>>, %arg3: memref<8x256xf32, #tpu.memory_space<vmem>>) attributes {dimension_semantics = [#tpu.dimension_semantics<parallel>], iteration_bounds = array<i64: 1>, scalar_prefetch = 0 : i64, scratch_operands = 0 : i64, tpu.core_type = #tpu.core_type<tc>, window_params = [{transform_indices = @transform_0, window_bounds = array<i64: 8, 256>}, {transform_indices = @transform_1, window_bounds = array<i64: 8, 128>}, {transform_indices = @transform_2, window_bounds = array<i64: 8, 256>}]} {
    %c0 = arith.constant 0 : index
    %c0_0 = arith.constant 0 : index
    %0 = vector.load %arg2[%c0, %c0_0] : memref<8x128xf32, #tpu.memory_space<vmem>>, vector<8x128xf32>
    %1 = tpu.concatenate %0, %0 in 1 : vector<8x128xf32>, vector<8x128xf32> -> vector<8x256xf32>
    %c0_1 = arith.constant 0 : index
    %c0_2 = arith.constant 0 : index
    %2 = vector.load %arg1[%c0_1, %c0_2] : memref<8x256xf32, #tpu.memory_space<vmem>>, vector<8x256xf32>
    %3 = arith.addf %2, %1 : vector<8x256xf32>
    %c0_3 = arith.constant 0 : index
    %c0_4 = arith.constant 0 : index
    %4 = vector.load %arg3[%c0_3, %c0_4] : memref<8x256xf32, #tpu.memory_space<vmem>>, vector<8x256xf32>
    tpu.vector_store %arg3[%c0_3, %c0_4], %3 {strides = array<i32>} : memref<8x256xf32, #tpu.memory_space<vmem>>, vector<8x256xf32>,
    return
  }
  func.func @transform_0(%arg0: i32) -> (i32, i32) {
    %c0_i32 = arith.constant 0 : i32
    %c0_i32_0 = arith.constant 0 : i32
    return %arg0, %c0_i32 : i32, i32
  }
  func.func @transform_1(%arg0: i32) -> (i32, i32) {
    %c0_i32 = arith.constant 0 : i32
    %c0_i32_0 = arith.constant 0 : i32
    return %arg0, %c0_i32 : i32, i32
  }
  func.func @transform_2(%arg0: i32) -> (i32, i32) {
    %c0_i32 = arith.constant 0 : i32
    %c0_i32_0 = arith.constant 0 : i32
    return %arg0, %c0_i32 : i32, i32
  }
}

</mosaic_0001>

<bundles_post_ra>
// kernel: tpu_custom_call.1
= control target key start
LH: loop header
LB: loop body
LE: loop exit
PB: predicated region body
PF: predicated region fallthrough
CT: control target
= control target key end

     0   :  { %7 = vsyncpa [#allocation3], 0  ;;  %s173_s0 = inlined_call_operand.hbm [shape: f32[8,256], index: 0, kind: input, shape index: {}]   ;;  %s174_s1 = inlined_call_operand.hbm [shape: f32[8,128], index: 1, kind: input, shape index: {}]   ;;  %s175_s2 = inlined_call_operand.hbm [shape: f32[8,256], index: 2, kind: output, shape index: {}]  }
   0x1   :  { %8 = vsyncpa [#allocation6], 0 }
   0x2   :  { %9 = vsyncpa [#allocation4], 0  ;;  %s15_s11 = sshll.u32 %s173_s0, 4  ;;  %s146_s12 = smov [#allocation2]   ;;  %s16_s11 = int_to_ptr.hbm [resolvable:$true] %s15_s11 }
   0x3   :  { %s17_s13 = sshll.u32 %s146_s12, 4  ;;  %s26_s16 = sshll.u32 %s174_s1, 4  ;;  %s18_s13 = int_to_ptr.vmem [resolvable:$true] %s17_s13  ;;  %s27_s16 = int_to_ptr.hbm [resolvable:$true] %s26_s16 }
   0x4   :  { %20 = dma.hbm_to_vmem [thread:$0]  %s16_s11, 256, %s18_s13, [#allocation3]  }
   0x5   :  { %s147_s17 = smov [#allocation5]  }
   0x6   :  { %s28_s18 = sshll.u32 %s147_s17, 4  ;;  %s29_s18 = int_to_ptr.vmem [resolvable:$true] %s28_s18 }
   0x7   :  { %31 = dma.hbm_to_vmem [thread:$0]  %s27_s16, 128, %s29_s18, [#allocation6]  }
   0x8   :  { %140 = dma.done.wait [#allocation3], 256  }
   0x9   :  { %141 = vsyncadd [#allocation3], 4294967040 }
   0xa   :  { %142 = dma.done.wait [#allocation6], 128  }
   0xb   :  { %143 = vsyncadd [#allocation6], 4294967168  ;;  %s148_s19 = smov [#allocation7]   ;;  %s54_s22 = sshll.u32 %s175_s2, 4  ;;  %v40_v0 = vld [vmem:[#allocation5] sm:$0xff]  ;;  %v41_v1 = vld [vmem:[#allocation2] sm:$0xff]  ;;  %s55_s22 = int_to_ptr.hbm [resolvable:$true] %s54_s22 }
   0xc   :  { %s52_s0 = sshll.u32 %s148_s19, 4  ;;  %v42_v2 = vld [vmem:[#allocation2 + $0x8] sm:$0xff]  ;;  %v43_v3 = vadd.f32 %v41_v1, %v40_v0  ;;  %s53_s0 = int_to_ptr.vmem [resolvable:$true] %s52_s0 }
   0xd   :  { %v44_v4 = vadd.f32 %v42_v2, %v40_v0 }
   0xe   :  { %45 = vst [vmem:[#allocation7] sm:$0xff] %v43_v3 }
   0xf   :  { %46 = vst [vmem:[#allocation7 + $0x8] sm:$0xff] %v44_v4 }
  0x10   :  { %57 = dma.vmem_to_hbm [thread:$0]  %s53_s0, 256, %s55_s22, [#allocation4]  }
  0x11   :  { %144 = dma.done.wait [#allocation4], 256  }
  0x12   :  { %145 = vsyncadd [#allocation4], 4294967040 }
  0x13   :  { %62 = vsyncpa [#allocation3], 1 }
  0x14   :  { %63 = vsyncpa [#allocation6], 1 }
  0x15   :  { %64 = vsyncpa [#allocation4], 1 }

</bundles_post_ra>
